<compile_context>
chip_gen: v5e
topology: v5e:2x2
jax: 0.10.0
libtpu: 0.0.40
codegen_flags: <defaults>
</compile_context>

<pallas_src>
import jax
import jax.numpy as jnp
from jax.experimental import pallas as pl
from jax.experimental.pallas import tpu as pltpu

N_FEAT = 3  # in_features == out_features == 3 for MockAIModel


def _round_up(x, m):
    return ((x + m - 1) // m) * m


def _linear_kernel(w_ref, b_ref, x_ref, o_ref):
    # w_ref: (9,)  f32 in SMEM, row-major (out, in) like PyTorch nn.Linear.weight
    # b_ref: (3,)  f32 in SMEM
    # x_ref: (3, TILE_N) in VMEM  -- features on sublanes, rows on lanes (lane-dense)
    # o_ref: (3, TILE_N) in VMEM
    x0 = x_ref[0:1, :].astype(jnp.float32)
    x1 = x_ref[1:2, :].astype(jnp.float32)
    x2 = x_ref[2:3, :].astype(jnp.float32)
    for o in range(N_FEAT):  # fully unrolled: 3 output rows, 3 fmas each (VPU only)
        acc = (x0 * w_ref[3 * o + 0]
               + x1 * w_ref[3 * o + 1]
               + x2 * w_ref[3 * o + 2]
               + b_ref[o])
        o_ref[o:o + 1, :] = acc.astype(o_ref.dtype)


def linear_pallas(x, w, b, *, tile_n=4096):
    """y = x @ w.T + b over the last axis of x (PyTorch Linear(3, 3) semantics)."""
    *lead, in_f = x.shape
    assert in_f == N_FEAT and w.shape == (N_FEAT, N_FEAT) and b.shape == (N_FEAT,)
    out_f = N_FEAT

    n = 1
    for d in lead:
        n *= d
    x2 = x.reshape(n, in_f)

    # Pad N to a lane-aligned tile multiple, then put N on the lane axis.
    n_pad = _round_up(max(n, 1), 128)
    if n_pad <= tile_n:
        tile = n_pad
    else:
        tile = tile_n
        n_pad = _round_up(n_pad, tile)
    if n_pad != n:
        x2 = jnp.pad(x2, ((0, n_pad - n), (0, 0)))
    x_t = x2.T  # (3, n_pad): lane-dense, features on sublanes

    grid = (n_pad // tile,)

    y_t = pl.pallas_call(
        _linear_kernel,
        out_shape=jax.ShapeDtypeStruct((out_f, n_pad), x.dtype),
        grid=grid,
        in_specs=[
            pl.BlockSpec(memory_space=pltpu.MemorySpace.SMEM),   # weights (flat 9)
            pl.BlockSpec(memory_space=pltpu.MemorySpace.SMEM),   # bias (3)
            pl.BlockSpec((out_f, tile), lambda i: (0, i)),       # x^T tile
        ],
        out_specs=pl.BlockSpec((out_f, tile), lambda i: (0, i)),
        compiler_params=pltpu.CompilerParams(
            dimension_semantics=("parallel",),      # shard N across TensorCores
            vmem_limit_bytes=32 * 1024 * 1024,      # tiny tiles; safe on v7x 64 MiB VMEM
        ),
    )(w.reshape(-1).astype(jnp.float32), b.astype(jnp.float32), x_t)

    y2 = y_t.T[:n]
    return y2.reshape(*lead, out_f)


if __name__ == "__main__":
    key = jax.random.PRNGKey(0)
    k_x, k_w, k_b = jax.random.split(key, 3)

    in_f, out_f = N_FEAT, N_FEAT
    # Deterministic PyTorch-style init: U(-1/sqrt(in_f), 1/sqrt(in_f))
    bound = 1.0 / jnp.sqrt(jnp.float32(in_f))
    w = jax.random.uniform(k_w, (out_f, in_f), jnp.float32, -bound, bound)
    b = jax.random.uniform(k_b, (out_f,), jnp.float32, -bound, bound)

    # Small input consistent with Linear(3, 3): batch=2, seq=8, features=3
    x = jax.random.normal(k_x, (2, 8, in_f), jnp.float32)

    y = linear_pallas(x, w, b)
    jax.block_until_ready(y)

    # Reference check in plain JAX
    y_ref = x @ w.T + b
    assert y.shape == (2, 8, out_f)
    assert jnp.allclose(y, y_ref, atol=1e-5), "mismatch vs reference"

    print("KERNEL_OK")
</pallas_src>

<mosaic_0001>
module attributes {stable_mosaic.version = 11 : i64} {
  func.func @_linear_kernel(%arg0: i32, %arg1: memref<9xf32, #tpu.memory_space<smem>>, %arg2: memref<3xf32, #tpu.memory_space<smem>>, %arg3: memref<3x128xf32, #tpu.memory_space<vmem>>, %arg4: memref<3x128xf32, #tpu.memory_space<vmem>>) attributes {dimension_semantics = [#tpu.dimension_semantics<parallel>], iteration_bounds = array<i64: 1>, scalar_prefetch = 0 : i64, scratch_operands = 0 : i64, tpu.core_type = #tpu.core_type<tc>, window_params = [{transform_indices = @transform_0, window_bounds = array<i64: 9>}, {transform_indices = @transform_1, window_bounds = array<i64: 3>}, {transform_indices = @transform_2, window_bounds = array<i64: 3, 128>}, {transform_indices = @transform_3, window_bounds = array<i64: 3, 128>}]} {
    %c0 = arith.constant 0 : index
    %c0_0 = arith.constant 0 : index
    %0 = vector.load %arg3[%c0, %c0_0] : memref<3x128xf32, #tpu.memory_space<vmem>>, vector<1x128xf32>
    %c1 = arith.constant 1 : index
    %c0_1 = arith.constant 0 : index
    %1 = vector.load %arg3[%c1, %c0_1] : memref<3x128xf32, #tpu.memory_space<vmem>>, vector<1x128xf32>
    %c2 = arith.constant 2 : index
    %c0_2 = arith.constant 0 : index
    %2 = vector.load %arg3[%c2, %c0_2] : memref<3x128xf32, #tpu.memory_space<vmem>>, vector<1x128xf32>
    %c0_3 = arith.constant 0 : index
    %3 = memref.load %arg1[%c0_3] : memref<9xf32, #tpu.memory_space<smem>>
    %4 = vector.broadcast %3 : f32 to vector<1x128xf32>
    %5 = arith.mulf %0, %4 : vector<1x128xf32>
    %c1_4 = arith.constant 1 : index
    %6 = memref.load %arg1[%c1_4] : memref<9xf32, #tpu.memory_space<smem>>
    %7 = vector.broadcast %6 : f32 to vector<1x128xf32>
    %8 = arith.mulf %1, %7 : vector<1x128xf32>
    %9 = arith.addf %5, %8 : vector<1x128xf32>
    %c2_5 = arith.constant 2 : index
    %10 = memref.load %arg1[%c2_5] : memref<9xf32, #tpu.memory_space<smem>>
    %11 = vector.broadcast %10 : f32 to vector<1x128xf32>
    %12 = arith.mulf %2, %11 : vector<1x128xf32>
    %13 = arith.addf %9, %12 : vector<1x128xf32>
    %c0_6 = arith.constant 0 : index
    %14 = memref.load %arg2[%c0_6] : memref<3xf32, #tpu.memory_space<smem>>
    %15 = vector.broadcast %14 : f32 to vector<1x128xf32>
    %16 = arith.addf %13, %15 : vector<1x128xf32>
    %c0_7 = arith.constant 0 : index
    %c0_8 = arith.constant 0 : index
    %17 = vector.load %arg4[%c0_7, %c0_8] : memref<3x128xf32, #tpu.memory_space<vmem>>, vector<1x128xf32>
    tpu.vector_store %arg4[%c0_7, %c0_8], %16 {strides = array<i32>} : memref<3x128xf32, #tpu.memory_space<vmem>>, vector<1x128xf32>,
    %c3 = arith.constant 3 : index
    %18 = memref.load %arg1[%c3] : memref<9xf32, #tpu.memory_space<smem>>
    %19 = vector.broadcast %18 : f32 to vector<1x128xf32>
    %20 = arith.mulf %0, %19 : vector<1x128xf32>
    %c4 = arith.constant 4 : index
    %21 = memref.load %arg1[%c4] : memref<9xf32, #tpu.memory_space<smem>>
    %22 = vector.broadcast %21 : f32 to vector<1x128xf32>
    %23 = arith.mulf %1, %22 : vector<1x128xf32>
    %24 = arith.addf %20, %23 : vector<1x128xf32>
    %c5 = arith.constant 5 : index
    %25 = memref.load %arg1[%c5] : memref<9xf32, #tpu.memory_space<smem>>
    %26 = vector.broadcast %25 : f32 to vector<1x128xf32>
    %27 = arith.mulf %2, %26 : vector<1x128xf32>
    %28 = arith.addf %24, %27 : vector<1x128xf32>
    %c1_9 = arith.constant 1 : index
    %29 = memref.load %arg2[%c1_9] : memref<3xf32, #tpu.memory_space<smem>>
    %30 = vector.broadcast %29 : f32 to vector<1x128xf32>
    %31 = arith.addf %28, %30 : vector<1x128xf32>
    %c1_10 = arith.constant 1 : index
    %c0_11 = arith.constant 0 : index
    %32 = vector.load %arg4[%c1_10, %c0_11] : memref<3x128xf32, #tpu.memory_space<vmem>>, vector<1x128xf32>
    tpu.vector_store %arg4[%c1_10, %c0_11], %31 {strides = array<i32>} : memref<3x128xf32, #tpu.memory_space<vmem>>, vector<1x128xf32>,
    %c6 = arith.constant 6 : index
    %33 = memref.load %arg1[%c6] : memref<9xf32, #tpu.memory_space<smem>>
    %34 = vector.broadcast %33 : f32 to vector<1x128xf32>
    %35 = arith.mulf %0, %34 : vector<1x128xf32>
    %c7 = arith.constant 7 : index
    %36 = memref.load %arg1[%c7] : memref<9xf32, #tpu.memory_space<smem>>
    %37 = vector.broadcast %36 : f32 to vector<1x128xf32>
    %38 = arith.mulf %1, %37 : vector<1x128xf32>
    %39 = arith.addf %35, %38 : vector<1x128xf32>
    %c8 = arith.constant 8 : index
    %40 = memref.load %arg1[%c8] : memref<9xf32, #tpu.memory_space<smem>>
    %41 = vector.broadcast %40 : f32 to vector<1x128xf32>
    %42 = arith.mulf %2, %41 : vector<1x128xf32>
    %43 = arith.addf %39, %42 : vector<1x128xf32>
    %c2_12 = arith.constant 2 : index
    %44 = memref.load %arg2[%c2_12] : memref<3xf32, #tpu.memory_space<smem>>
    %45 = vector.broadcast %44 : f32 to vector<1x128xf32>
    %46 = arith.addf %43, %45 : vector<1x128xf32>
    %c2_13 = arith.constant 2 : index
    %c0_14 = arith.constant 0 : index
    %47 = vector.load %arg4[%c2_13, %c0_14] : memref<3x128xf32, #tpu.memory_space<vmem>>, vector<1x128xf32>
    tpu.vector_store %arg4[%c2_13, %c0_14], %46 {strides = array<i32>} : memref<3x128xf32, #tpu.memory_space<vmem>>, vector<1x128xf32>,
    return
  }
  func.func @transform_0(%arg0: i32) -> i32 {
    %c0_i32 = arith.constant 0 : i32
    %c0_i32_0 = arith.constant 0 : i32
    return %c0_i32 : i32
  }
  func.func @transform_1(%arg0: i32) -> i32 {
    %c0_i32 = arith.constant 0 : i32
    %c0_i32_0 = arith.constant 0 : i32
    return %c0_i32 : i32
  }
  func.func @transform_2(%arg0: i32) -> (i32, i32) {
    %c0_i32 = arith.constant 0 : i32
    %c0_i32_0 = arith.constant 0 : i32
    return %c0_i32, %arg0 : i32, i32
  }
  func.func @transform_3(%arg0: i32) -> (i32, i32) {
    %c0_i32 = arith.constant 0 : i32
    %c0_i32_0 = arith.constant 0 : i32
    return %c0_i32, %arg0 : i32, i32
  }
}

</mosaic_0001>

<bundles_post_ra>
// kernel: tpu_custom_call.1
= control target key start
LH: loop header
LB: loop body
LE: loop exit
PB: predicated region body
PF: predicated region fallthrough
CT: control target
= control target key end

     0   :  { %8 = vsyncpa [#allocation5], 0  ;;  %s251_s0 = inlined_call_operand.hbm [shape: f32[9], index: 0, kind: input, shape index: {}]   ;;  %s252_s1 = inlined_call_operand.hbm [shape: f32[3], index: 1, kind: input, shape index: {}]   ;;  %s253_s2 = inlined_call_operand.hbm [shape: f32[3,128], index: 2, kind: input, shape index: {}]   ;;  %s254_s3 = inlined_call_operand.hbm [shape: f32[3,128], index: 3, kind: output, shape index: {}]  }
   0x1   :  { %9 = vsyncpa [#allocation7], 0 }
   0x2   :  { %10 = vsyncpa [#allocation3], 0 }
   0x3   :  { %11 = vsyncpa [#allocation4], 0  ;;  %s17_s14 = sshll.u32 %s251_s0, 4  ;;  %s26_s17 = sshll.u32 %s252_s1, 4  ;;  %s18_s14 = int_to_ptr.hbm [resolvable:$true] %s17_s14  ;;  %s27_s17 = int_to_ptr.hbm [resolvable:$true] %s26_s17 }
   0x4   :  { %s215_s18 = smov [#allocation2]   ;;  %s216_s19 = smov [#allocation6]  }
   0x5   :  { %20 = dma.hbm_to_smem %s18_s14, 16, %s215_s18, [#allocation5]  }
   0x6   :  { %29 = dma.hbm_to_smem %s27_s17, 16, %s216_s19, [#allocation7]  }
   0x7   :  { %s35_s22 = sshll.u32 %s253_s2, 4  ;;  %s217_s23 = smov [#allocation8]   ;;  %s36_s22 = int_to_ptr.hbm [resolvable:$true] %s35_s22 }
   0x8   :  { %s37_s24 = sshll.u32 %s217_s23, 4  ;;  %s38_s24 = int_to_ptr.vmem [resolvable:$true] %s37_s24 }
   0x9   :  { %40 = dma.hbm_to_vmem [thread:$0]  %s36_s22, 64, %s38_s24, [#allocation3]  }
   0xa   :  { %207 = dma.done.wait [#allocation5], 16  }
   0xb   :  { %208 = vsyncadd [#allocation5], 4294967280 }
   0xc   :  { %209 = dma.done.wait [#allocation7], 16  }
   0xd   :  { %210 = vsyncadd [#allocation7], 4294967280 }
   0xe   :  { %211 = dma.done.wait [#allocation3], 64  }
   0xf   :  { %212 = vsyncadd [#allocation3], 4294967232 }
  0x10   :  { %53 = sfence }
  0x11   :  { %s57_s0 = sld [smem:[#allocation2]]  ;;  %v54_v0 = vld [vmem:[#allocation8] sm:$0x1]  ;;  %v55_v1 = vld [vmem:[#allocation8 + $0x1] sm:$0x1]  ;;  %s218_s7 = smov [#allocation9]  }
  0x12   :  { %s121_s1 = sld [smem:[#allocation2 + $0x1]]  ;;  %v56_v2 = vld [vmem:[#allocation8 + $0x2] sm:$0x1]  ;;  %s107_s8 = sshll.u32 %s218_s7, 4  ;;  %s108_s8 = int_to_ptr.vmem [resolvable:$true] %s107_s8 }
  0x13   :  { %s122_s25 = sld [smem:[#allocation2 + $0x2]]  ;;  %s109_s11 = sshll.u32 %s254_s3, 4  ;;  %s110_s11 = int_to_ptr.hbm [resolvable:$true] %s109_s11 }
  0x14   :  { %s68_s26 = sld [smem:[#allocation6]] }
  0x15   :  { %s123_s27 = sld [smem:[#allocation2 + $0x3]] }
  0x16   :  { %s124_s2 = sld [smem:[#allocation2 + $0x4]] }
  0x17   :  { %v58_v3 = vstv %s57_s0  ;;  %s125_s28 = sld [smem:[#allocation2 + $0x5]] }
  0x18   :  { %v59_v4 = vmul.f32 %v58_v3, %v54_v0  ;;  %v61_v5 = vstv %s121_s1  ;;  %s126_s29 = sld [smem:[#allocation6 + $0x1]] }
  0x19   :  { %v62_v6 = vmul.f32 %v61_v5, %v55_v1  ;;  %v65_v7 = vstv %s122_s25  ;;  %s127_s30 = sld [smem:[#allocation2 + $0x6]] }
  0x1a   :  { %v66_v8 = vmul.f32 %v65_v7, %v56_v2  ;;  %s128_s4 = sld [smem:[#allocation2 + $0x7]]  ;;  %v69_v11 = vstv %s68_s26 }
  0x1b   :  { %v63_v9 = vadd.f32 %v62_v6, %v59_v4  ;;  %v73_v10 = vstv %s123_s27  ;;  %s129_s5 = sld [smem:[#allocation2 + $0x8]] }
  0x1c   :  { %v74_v12 = vmul.f32 %v73_v10, %v54_v0  ;;  %v76_v13 = vstv %s124_s2  ;;  %s130_s6 = sld [smem:[#allocation6 + $0x2]] }
  0x1d   :  { %v67_v14 = vadd.f32 %v66_v8, %v63_v9  ;;  %v77_v15 = vmul.f32 %v76_v13, %v55_v1  ;;  %v80_v16 = vstv %s125_s28 }
  0x1e   :  { %v81_v17 = vmul.f32 %v80_v16, %v56_v2  ;;  %v84_v21 = vstv %s126_s29 }
  0x1f   :  { %v70_v18 = vadd.f32 %v69_v11, %v67_v14  ;;  %v78_v19 = vadd.f32 %v77_v15, %v74_v12  ;;  %v88_v20 = vstv %s127_s30 }
  0x20   :  { %v89_v22 = vmul.f32 %v88_v20, %v54_v0  ;;  %v91_v23 = vstv %s128_s4 }
  0x21   :  { %71 = vst [vmem:[#allocation9] sm:$0x1] %v70_v18  ;;  %v82_v24 = vadd.f32 %v81_v17, %v78_v19  ;;  %v92_v25 = vmul.f32 %v91_v23, %v55_v1  ;;  %v95_v26 = vstv %s129_s5 }
  0x22   :  { %v96_v27 = vmul.f32 %v95_v26, %v56_v2  ;;  %v99_v30 = vstv %s130_s6 }
  0x23   :  { %v85_v28 = vadd.f32 %v84_v21, %v82_v24  ;;  %v93_v29 = vadd.f32 %v92_v25, %v89_v22 }
  0x25   :  { %86 = vst [vmem:[#allocation9 + $0x1] sm:$0x1] %v85_v28  ;;  %v97_v31 = vadd.f32 %v96_v27, %v93_v29 }
  0x27   :  { %v100_v32 = vadd.f32 %v99_v30, %v97_v31 }
  0x29   :  { %101 = vst [vmem:[#allocation9 + $0x2] sm:$0x1] %v100_v32 }
  0x2a   :  { %112 = dma.vmem_to_hbm [thread:$0]  %s108_s8, 64, %s110_s11, [#allocation4]  }
  0x2b   :  { %213 = dma.done.wait [#allocation4], 64  }
  0x2c   :  { %214 = vsyncadd [#allocation4], 4294967232 }
  0x2d   :  { %117 = vsyncpa [#allocation3], 1 }
  0x2e   :  { %118 = vsyncpa [#allocation4], 1 }
  0x2f   :  { %119 = vsyncpa [#allocation5], 1 }
  0x30   :  { %120 = vsyncpa [#allocation7], 1 }

</bundles_post_ra>
